<compile_context>
chip_gen: v7x
topology: tpu7x:2x2x1
jax: 0.10.0
libtpu: 0.0.40
codegen_flags: <defaults>
</compile_context>

<pallas_src>
import jax
import jax.numpy as jnp
from jax.experimental import pallas as pl
from jax.experimental.pallas import tpu as pltpu

LANE = 128
SUBLANE = 8


def _round_up(a, b):
    return (a + b - 1) // b * b


def _ffn_expert_kernel(x_ref, w1_ref, b1_ref, w2_ref, b2_ref, w3_ref, b3_ref,
                       o_ref, acc_ref):
    j = pl.program_id(1)

    @pl.when(j == 0)
    def _init():
        acc_ref[...] = jnp.zeros_like(acc_ref)

    x = x_ref[...]                                   # (tm, Hp) bf16

    # linear1 / linear2 column blocks: bf16 operands, f32 accumulation (MXU).
    h1 = jnp.dot(x, w1_ref[...], preferred_element_type=jnp.float32) + b1_ref[...]
    h2 = jnp.dot(x, w2_ref[...], preferred_element_type=jnp.float32) + b2_ref[...]

    # SiLU gate in f32; the divide goes to the EUP slot via approx reciprocal.
    sig = pl.reciprocal(1.0 + jnp.exp(-h1), approx=True)
    gated = (h1 * sig) * h2                          # (tm, tj) f32

    # Partial linear3: accumulate this intermediate block's contribution.
    acc_ref[...] += jnp.dot(gated.astype(w3_ref.dtype), w3_ref[...],
                            preferred_element_type=jnp.float32)

    @pl.when(j == pl.num_programs(1) - 1)
    def _finish():
        o_ref[...] = (acc_ref[...] + b3_ref[...]).astype(o_ref.dtype)


def prepare_params(torch_params, *, param_dtype=jnp.bfloat16):
    """One-time layout conversion (call OUTSIDE the per-step path).

    PyTorch layout: w_i is (out, in), b_i is (out,).
    Kernel layout:  w_i transposed to (in, out), zero-padded to (Hp, Hp) with
    Hp = round_up(H, 128), cast to `param_dtype`; biases kept f32 as (1, Hp).
    """
    H = torch_params["w1"].shape[0]
    Hp = _round_up(H, LANE)
    pad = Hp - H

    def prep_w(w):
        wt = jnp.asarray(w, jnp.float32).T                    # (in, out)
        return jnp.pad(wt, ((0, pad), (0, pad))).astype(param_dtype)

    def prep_b(b):
        return jnp.pad(jnp.asarray(b, jnp.float32).reshape(1, H),
                       ((0, 0), (0, pad)))

    return {
        "w1": prep_w(torch_params["w1"]), "b1": prep_b(torch_params["b1"]),
        "w2": prep_w(torch_params["w2"]), "b2": prep_b(torch_params["b2"]),
        "w3": prep_w(torch_params["w3"]), "b3": prep_b(torch_params["b3"]),
    }


def feed_forward_expert(x, params, *, tm=None, tj=None,
                        compute_dtype=jnp.bfloat16):
    """x: (..., H) float32.  params: output of prepare_params().

    tm: token tile (default 256 to fill the 256-wide MXU on v6e/v7x; use 128
        on v5e).  tj: intermediate-dim tile (must divide the padded hidden).
    """
    orig_shape = x.shape
    H = orig_shape[-1]
    x2 = x.reshape(-1, H)
    N = x2.shape[0]
    Hp = params["w1"].shape[0]
    assert params["w1"].shape == (Hp, Hp) and Hp % LANE == 0 and Hp >= H

    # ---- tile plan -------------------------------------------------------
    if tm is None:
        tm = 256
    tm = min(_round_up(tm, SUBLANE), _round_up(N, SUBLANE))
    Np = _round_up(N, tm)

    if tj is None:
        tj = 512
    tj = min(tj, Hp)
    if Hp % tj != 0:
        tj = LANE                                    # Hp is a multiple of 128
    n_i, n_j = Np // tm, Hp // tj

    # ---- VMEM budget for this plan (double-buffered I/O + f32 accumulator) -
    wb = jnp.dtype(params["w1"].dtype).itemsize
    cb = jnp.dtype(compute_dtype).itemsize
    ob = jnp.dtype(x.dtype).itemsize
    est = (2 * tm * Hp * cb                  # x tiles
           + 2 * 2 * Hp * tj * wb            # w1, w2 tiles
           + 2 * tj * Hp * wb                # w3 tiles
           + 2 * 2 * tj * 4 + 2 * Hp * 4     # bias tiles
           + tm * Hp * 4                     # accumulator scratch
           + 2 * tm * Hp * ob)               # output tiles
    vmem_limit = min(max(int(est * 1.5) + (2 << 20), 16 << 20), 64 << 20)

    # ---- pad activations to the tile plan (zeros are exact no-ops here) ----
    xp = jnp.pad(x2, ((0, Np - N), (0, Hp - H))).astype(compute_dtype)

    out = pl.pallas_call(
        _ffn_expert_kernel,
        out_shape=jax.ShapeDtypeStruct((Np, Hp), x.dtype),
        grid_spec=pltpu.PrefetchScalarGridSpec(
            num_scalar_prefetch=0,
            grid=(n_i, n_j),
            in_specs=[
                pl.BlockSpec((tm, Hp), lambda i, j: (i, 0)),   # x tile
                pl.BlockSpec((Hp, tj), lambda i, j: (0, j)),   # W1^T col block
                pl.BlockSpec((1, tj), lambda i, j: (0, j)),    # b1 block
                pl.BlockSpec((Hp, tj), lambda i, j: (0, j)),   # W2^T col block
                pl.BlockSpec((1, tj), lambda i, j: (0, j)),    # b2 block
                pl.BlockSpec((tj, Hp), lambda i, j: (j, 0)),   # W3^T row block
                pl.BlockSpec((1, Hp), lambda i, j: (0, 0)),    # b3 (full)
            ],
            out_specs=pl.BlockSpec((tm, Hp), lambda i, j: (i, 0)),
            scratch_shapes=[pltpu.VMEM((tm, Hp), jnp.float32)],
        ),
        compiler_params=pltpu.CompilerParams(
            dimension_semantics=("parallel", "arbitrary"),
            vmem_limit_bytes=vmem_limit),
    )(xp, params["w1"], params["b1"], params["w2"], params["b2"],
      params["w3"], params["b3"])

    return out[:N, :H].reshape(orig_shape)


def _init_params(key, hidden_dim):
    """Deterministic synthetic init mimicking nn.Linear's uniform(-k, k),
    in PyTorch layout (w: (out, in), b: (out,))."""
    keys = jax.random.split(key, 6)
    k = 1.0 / jnp.sqrt(hidden_dim)

    def u(kk, shape):
        return jax.random.uniform(kk, shape, jnp.float32, minval=-k, maxval=k)

    return {
        "w1": u(keys[0], (hidden_dim, hidden_dim)), "b1": u(keys[1], (hidden_dim,)),
        "w2": u(keys[2], (hidden_dim, hidden_dim)), "b2": u(keys[3], (hidden_dim,)),
        "w3": u(keys[4], (hidden_dim, hidden_dim)), "b3": u(keys[5], (hidden_dim,)),
    }


def _reference(x, p):
    def linear(x, w, b):
        return x @ w.T + b
    h = jax.nn.silu(linear(x, p["w1"], p["b1"])) * linear(x, p["w2"], p["b2"])
    return linear(h, p["w3"], p["b3"])


if __name__ == "__main__":
    key = jax.random.PRNGKey(0)
    hidden_dim = 32
    batch, seq = 2, 4          # 8 tokens, flattened internally to (N, H)

    kx, kp = jax.random.split(key)
    x = jax.random.normal(kx, (batch, seq, hidden_dim), jnp.float32)
    torch_params = _init_params(kp, hidden_dim)

    params = prepare_params(torch_params)      # one-time layout conversion
    out = feed_forward_expert(x, params)
    out = jax.block_until_ready(out)

    ref = _reference(x, torch_params)
    assert out.shape == x.shape
    # bf16 MXU operands + approx reciprocal vs. a pure-f32 reference, hence a
    # correspondingly relaxed tolerance (values are O(0.1 - 1)).
    assert jnp.allclose(out, ref, atol=3e-2, rtol=3e-2), \
        float(jnp.max(jnp.abs(out - ref)))

    print("KERNEL_OK")
</pallas_src>

<mosaic_0001>
module attributes {stable_mosaic.version = 11 : i64} {
  func.func @_ffn_expert_kernel(%arg0: i32, %arg1: i32, %arg2: memref<8x128xbf16, #tpu.memory_space<vmem>>, %arg3: memref<128x128xbf16, #tpu.memory_space<vmem>>, %arg4: memref<1x128xf32, #tpu.memory_space<vmem>>, %arg5: memref<128x128xbf16, #tpu.memory_space<vmem>>, %arg6: memref<1x128xf32, #tpu.memory_space<vmem>>, %arg7: memref<128x128xbf16, #tpu.memory_space<vmem>>, %arg8: memref<1x128xf32, #tpu.memory_space<vmem>>, %arg9: memref<8x128xf32, #tpu.memory_space<vmem>>, %arg10: memref<8x128xf32, #tpu.memory_space<vmem>>) attributes {dimension_semantics = [#tpu.dimension_semantics<parallel>, #tpu.dimension_semantics<arbitrary>], iteration_bounds = array<i64: 1, 1>, scalar_prefetch = 0 : i64, scratch_operands = 1 : i64, tpu.core_type = #tpu.core_type<tc>, window_params = [{transform_indices = @transform_0, window_bounds = array<i64: 8, 128>}, {transform_indices = @transform_1, window_bounds = array<i64: 128, 128>}, {transform_indices = @transform_2, window_bounds = array<i64: 1, 128>}, {transform_indices = @transform_3, window_bounds = array<i64: 128, 128>}, {transform_indices = @transform_4, window_bounds = array<i64: 1, 128>}, {transform_indices = @transform_5, window_bounds = array<i64: 128, 128>}, {pipeline_mode = #tpu.pipeline_mode<synchronous>, transform_indices = @transform_6, window_bounds = array<i64: 1, 128>}, {transform_indices = @transform_7, window_bounds = array<i64: 8, 128>}]} {
    %c0_i32 = arith.constant 0 : i32
    %0 = arith.cmpi eq, %arg1, %c0_i32 : i32
    %1 = arith.extui %0 : i1 to i32
    %c0_i32_0 = arith.constant 0 : i32
    %2 = arith.cmpi ne, %1, %c0_i32_0 : i32
    scf.if %2 {
      %cst_22 = arith.constant 0.000000e+00 : f32
      %31 = vector.broadcast %cst_22 : f32 to vector<8x128xf32>
      %c0_23 = arith.constant 0 : index
      %c0_24 = arith.constant 0 : index
      %32 = vector.load %arg10[%c0_23, %c0_24] : memref<8x128xf32, #tpu.memory_space<vmem>>, vector<8x128xf32>
      tpu.vector_store %arg10[%c0_23, %c0_24], %31 {strides = array<i32>} : memref<8x128xf32, #tpu.memory_space<vmem>>, vector<8x128xf32>,
    } else {
    }
    %c0 = arith.constant 0 : index
    %c0_1 = arith.constant 0 : index
    %3 = vector.load %arg2[%c0, %c0_1] : memref<8x128xbf16, #tpu.memory_space<vmem>>, vector<8x128xbf16>
    %c0_2 = arith.constant 0 : index
    %c0_3 = arith.constant 0 : index
    %4 = vector.load %arg3[%c0_2, %c0_3] : memref<128x128xbf16, #tpu.memory_space<vmem>>, vector<128x128xbf16>
    %cst = arith.constant dense<0.000000e+00> : vector<8x128xf32>
    %5 = tpu.matmul %3, %4, %cst {dimension_numbers = #tpu.dot_dimension_numbers<[1], [0], [0], [1], [0, 0, 1, 1], [], []>} : vector<8x128xbf16>, vector<128x128xbf16>, vector<8x128xf32> -> vector<8x128xf32>
    %c0_4 = arith.constant 0 : index
    %c0_5 = arith.constant 0 : index
    %6 = vector.load %arg4[%c0_4, %c0_5] : memref<1x128xf32, #tpu.memory_space<vmem>>, vector<1x128xf32>
    %7 = vector.broadcast %6 : vector<1x128xf32> to vector<8x128xf32>
    %8 = arith.addf %5, %7 : vector<8x128xf32>
    %c0_6 = arith.constant 0 : index
    %c0_7 = arith.constant 0 : index
    %9 = vector.load %arg5[%c0_6, %c0_7] : memref<128x128xbf16, #tpu.memory_space<vmem>>, vector<128x128xbf16>
    %cst_8 = arith.constant dense<0.000000e+00> : vector<8x128xf32>
    %10 = tpu.matmul %3, %9, %cst_8 {dimension_numbers = #tpu.dot_dimension_numbers<[1], [0], [0], [1], [0, 0, 1, 1], [], []>} : vector<8x128xbf16>, vector<128x128xbf16>, vector<8x128xf32> -> vector<8x128xf32>
    %c0_9 = arith.constant 0 : index
    %c0_10 = arith.constant 0 : index
    %11 = vector.load %arg6[%c0_9, %c0_10] : memref<1x128xf32, #tpu.memory_space<vmem>>, vector<1x128xf32>
    %12 = vector.broadcast %11 : vector<1x128xf32> to vector<8x128xf32>
    %13 = arith.addf %10, %12 : vector<8x128xf32>
    %cst_11 = arith.constant 0.000000e+00 : f32
    %14 = vector.broadcast %cst_11 : f32 to vector<8x128xf32>
    %15 = arith.subf %14, %8 : vector<8x128xf32>
    %16 = math.exp %15 : vector<8x128xf32>
    %cst_12 = arith.constant 1.000000e+00 : f32
    %17 = vector.broadcast %cst_12 : f32 to vector<8x128xf32>
    %18 = arith.addf %17, %16 : vector<8x128xf32>
    %19 = tpu.reciprocal %18 {approx = true} : vector<8x128xf32> -> vector<8x128xf32>
    %20 = arith.mulf %8, %19 : vector<8x128xf32>
    %21 = arith.mulf %20, %13 : vector<8x128xf32>
    %c0_13 = arith.constant 0 : index
    %c0_14 = arith.constant 0 : index
    %22 = vector.load %arg10[%c0_13, %c0_14] : memref<8x128xf32, #tpu.memory_space<vmem>>, vector<8x128xf32>
    %23 = arith.truncf %21 : vector<8x128xf32> to vector<8x128xbf16>
    %c0_15 = arith.constant 0 : index
    %c0_16 = arith.constant 0 : index
    %24 = vector.load %arg7[%c0_15, %c0_16] : memref<128x128xbf16, #tpu.memory_space<vmem>>, vector<128x128xbf16>
    %cst_17 = arith.constant dense<0.000000e+00> : vector<8x128xf32>
    %25 = tpu.matmul %23, %24, %cst_17 {dimension_numbers = #tpu.dot_dimension_numbers<[1], [0], [0], [1], [0, 0, 1, 1], [], []>} : vector<8x128xbf16>, vector<128x128xbf16>, vector<8x128xf32> -> vector<8x128xf32>
    %26 = arith.addf %22, %25 : vector<8x128xf32>
    %c0_18 = arith.constant 0 : index
    %c0_19 = arith.constant 0 : index
    %27 = vector.load %arg10[%c0_18, %c0_19] : memref<8x128xf32, #tpu.memory_space<vmem>>, vector<8x128xf32>
    tpu.vector_store %arg10[%c0_18, %c0_19], %26 {strides = array<i32>} : memref<8x128xf32, #tpu.memory_space<vmem>>, vector<8x128xf32>,
    %c0_i32_20 = arith.constant 0 : i32
    %28 = arith.cmpi eq, %arg1, %c0_i32_20 : i32
    %29 = arith.extui %28 : i1 to i32
    %c0_i32_21 = arith.constant 0 : i32
    %30 = arith.cmpi ne, %29, %c0_i32_21 : i32
    scf.if %30 {
      %c0_22 = arith.constant 0 : index
      %c0_23 = arith.constant 0 : index
      %31 = vector.load %arg10[%c0_22, %c0_23] : memref<8x128xf32, #tpu.memory_space<vmem>>, vector<8x128xf32>
      %c0_24 = arith.constant 0 : index
      %c0_25 = arith.constant 0 : index
      %32 = vector.load %arg8[%c0_24, %c0_25] : memref<1x128xf32, #tpu.memory_space<vmem>>, vector<1x128xf32>
      %33 = vector.broadcast %32 : vector<1x128xf32> to vector<8x128xf32>
      %34 = arith.addf %31, %33 : vector<8x128xf32>
      %c0_26 = arith.constant 0 : index
      %c0_27 = arith.constant 0 : index
      %35 = vector.load %arg9[%c0_26, %c0_27] : memref<8x128xf32, #tpu.memory_space<vmem>>, vector<8x128xf32>
      tpu.vector_store %arg9[%c0_26, %c0_27], %34 {strides = array<i32>} : memref<8x128xf32, #tpu.memory_space<vmem>>, vector<8x128xf32>,
    } else {
    }
    return
  }
  func.func @transform_0(%arg0: i32, %arg1: i32) -> (i32, i32) {
    %c0_i32 = arith.constant 0 : i32
    %c0_i32_0 = arith.constant 0 : i32
    return %arg0, %c0_i32 : i32, i32
  }
  func.func @transform_1(%arg0: i32, %arg1: i32) -> (i32, i32) {
    %c0_i32 = arith.constant 0 : i32
    %c0_i32_0 = arith.constant 0 : i32
    return %c0_i32, %arg1 : i32, i32
  }
  func.func @transform_2(%arg0: i32, %arg1: i32) -> (i32, i32) {
    %c0_i32 = arith.constant 0 : i32
    %c0_i32_0 = arith.constant 0 : i32
    return %c0_i32, %arg1 : i32, i32
  }
  func.func @transform_3(%arg0: i32, %arg1: i32) -> (i32, i32) {
    %c0_i32 = arith.constant 0 : i32
    %c0_i32_0 = arith.constant 0 : i32
    return %c0_i32, %arg1 : i32, i32
  }
  func.func @transform_4(%arg0: i32, %arg1: i32) -> (i32, i32) {
    %c0_i32 = arith.constant 0 : i32
    %c0_i32_0 = arith.constant 0 : i32
    return %c0_i32, %arg1 : i32, i32
  }
  func.func @transform_5(%arg0: i32, %arg1: i32) -> (i32, i32) {
    %c0_i32 = arith.constant 0 : i32
    %c0_i32_0 = arith.constant 0 : i32
    return %arg1, %c0_i32 : i32, i32
  }
  func.func @transform_6(%arg0: i32, %arg1: i32) -> (i32, i32) {
    %c0_i32 = arith.constant 0 : i32
    %c0_i32_0 = arith.constant 0 : i32
    %c0_i32_1 = arith.constant 0 : i32
    return %c0_i32, %c0_i32_0 : i32, i32
  }
  func.func @transform_7(%arg0: i32, %arg1: i32) -> (i32, i32) {
    %c0_i32 = arith.constant 0 : i32
    %c0_i32_0 = arith.constant 0 : i32
    return %arg0, %c0_i32 : i32, i32
  }
}

</mosaic_0001>

<bundles_post_ra>
// kernel: tpu_custom_call.1
= control target key start
LH: loop header
LB: loop body
LE: loop exit
PB: predicated region body
PF: predicated region fallthrough
CT: control target
= control target key end

     0   :  { %12 = vsyncpa [#allocation4], 0  ;;  %s880_s0 = inlined_call_operand.hbm [shape: bf16[8,128], index: 0, kind: input, shape index: {}]   ;;  %s881_s1 = inlined_call_operand.hbm [shape: bf16[128,128], index: 1, kind: input, shape index: {}]   ;;  %s882_s2 = inlined_call_operand.vmem [shape: f32[1,128], index: 2, kind: input, shape index: {}]   ;;  %s883_s3 = inlined_call_operand.hbm [shape: bf16[128,128], index: 3, kind: input, shape index: {}]   ;;  %s884_s4 = inlined_call_operand.vmem [shape: f32[1,128], index: 4, kind: input, shape index: {}]   ;;  %s885_s5 = inlined_call_operand.hbm [shape: bf16[128,128], index: 5, kind: input, shape index: {}]   ;;  %s886_s6 = inlined_call_operand.vmem [shape: f32[1,128], index: 6, kind: input, shape index: {}]   ;;  %s887_s7 = inlined_call_operand.hbm [shape: f32[8,128], index: 7, kind: output, shape index: {}]  }
   0x1   :  { %13 = vsyncpa [#allocation7], 0 }
   0x2   :  { %14 = vsyncpa [#allocation10], 0 }
   0x3   :  { %15 = vsyncpa [#allocation5], 0  ;;  %s723_s24 = smov [#allocation6]   ;;  %s605_s28 = scalar_lea.hbm %s881_s1, 1024 }
   0x4   :  { %s31_s25 = sshll.u32 %s723_s24, 4  ;;  %p606_p0 = scmp.ne.s32.totalorder %s881_s1, %s605_s28  ;;  %s32_s25 = int_to_ptr.vmem [resolvable:$true] %s31_s25 }
   0x5   :  { %p609_p1 = scmp.lt.u32.totalorder %s605_s28, %s881_s1 }
   0x7   :  { %p611_p2 = pnand %p609_p1, %p606_p0 }
   0x9   :  { %614 = shalt.err (!%p611_p2)
}
   0xa   :  { %s615_s10 = scalar_lea.vmem %s32_s25, 1024  ;;  %p620_p4 = scmp.lt.s32.totalorder %s32_s25, %s32_s25 }
   0xb   :  { %p616_p3 = scmp.ne.s32.totalorder %s32_s25, %s615_s10  ;;  %p621_p5 = scmp.lt.s32.totalorder %s615_s10, %s615_s10 }
   0xd   :  { %p622_p6 = por %p621_p5, %p620_p4 }
   0xf   :  { %p623_p7 = pnand %p622_p6, %p616_p3 }
  0x11   :  { %626 = shalt.err (!%p623_p7)
}
  0x12   :  { %s724_s11 = smov 64   ;;  %s725_s12 = smov 4  }
  0x13   :  { %37 = dma.hbm_to_vmem [thread:$0]  %s881_s1, 1024, %s32_s25, [#allocation7], %s724_s11, %s724_s11, %s725_s12  }
  0x14   :  { %s726_s15 = smov [#allocation3]   ;;  %s727_s17 = smov [#allocation8]  }
  0x15   :  { %s22_s16 = sshll.u32 %s726_s15, 4  ;;  %s45_s18 = sshll.u32 %s727_s17, 4  ;;  %s23_s16 = int_to_ptr.vmem [resolvable:$true] %s22_s16  ;;  %s46_s18 = int_to_ptr.vmem [resolvable:$true] %s45_s18 }
  0x16   :  { %s627_s21 = scalar_lea.hbm %s880_s0, 64 }
  0x17   :  { %p628_p8 = scmp.ne.s32.totalorder %s880_s0, %s627_s21  ;;  %p631_p9 = scmp.lt.u32.totalorder %s627_s21, %s880_s0 }
  0x19   :  { %p633_p10 = pnand %p631_p9, %p628_p8 }
  0x1b   :  { %636 = shalt.err (!%p633_p10)
}
  0x1c   :  { %s637_s1 = scalar_lea.vmem %s23_s16, 64  ;;  %p642_p12 = scmp.lt.s32.totalorder %s23_s16, %s23_s16 }
  0x1d   :  { %p638_p11 = scmp.ne.s32.totalorder %s23_s16, %s637_s1  ;;  %p643_p13 = scmp.lt.s32.totalorder %s637_s1, %s637_s1 }
  0x1f   :  { %p644_p0 = por %p643_p13, %p642_p12 }
  0x21   :  { %p645_p1 = pnand %p644_p0, %p638_p11 }
  0x23   :  { %648 = shalt.err (!%p645_p1)
}
  0x24   :  { %25 = dma.hbm_to_vmem [thread:$0]  %s880_s0, 64, %s23_s16, [#allocation4]  }
  0x25   :  { %s649_s30 = scalar_lea.hbm %s883_s3, 1024 }
  0x26   :  { %p650_p2 = scmp.ne.s32.totalorder %s883_s3, %s649_s30  ;;  %p653_p3 = scmp.lt.u32.totalorder %s649_s30, %s883_s3 }
  0x28   :  { %p655_p4 = pnand %p653_p3, %p650_p2 }
  0x2a   :  { %658 = shalt.err (!%p655_p4)
}
  0x2b   :  { %s659_s14 = scalar_lea.vmem %s46_s18, 1024  ;;  %p664_p6 = scmp.lt.s32.totalorder %s46_s18, %s46_s18 }
  0x2c   :  { %p660_p5 = scmp.ne.s32.totalorder %s46_s18, %s659_s14  ;;  %p665_p7 = scmp.lt.s32.totalorder %s659_s14, %s659_s14 }
  0x2e   :  { %p666_p8 = por %p665_p7, %p664_p6 }
  0x30   :  { %p667_p9 = pnand %p666_p8, %p660_p5 }
  0x32   :  { %670 = shalt.err (!%p667_p9)
}
  0x33   :  { %51 = dma.hbm_to_vmem [thread:$0]  %s883_s3, 1024, %s46_s18, [#allocation7], %s724_s11, %s724_s11, %s725_s12  }
  0x34   :  { %s728_s16 = smov [#allocation9]   ;;  %s671_s21 = scalar_lea.hbm %s885_s5, 1024 }
  0x35   :  { %s59_s17 = sshll.u32 %s728_s16, 4  ;;  %p672_p10 = scmp.ne.s32.totalorder %s885_s5, %s671_s21  ;;  %s60_s17 = int_to_ptr.vmem [resolvable:$true] %s59_s17 }
  0x36   :  { %p675_p11 = scmp.lt.u32.totalorder %s671_s21, %s885_s5 }
  0x38   :  { %p677_p12 = pnand %p675_p11, %p672_p10 }
  0x3a   :  { %680 = shalt.err (!%p677_p12)
}
  0x3b   :  { %s681_s1 = scalar_lea.vmem %s60_s17, 1024  ;;  %p686_p0 = scmp.lt.s32.totalorder %s60_s17, %s60_s17 }
  0x3c   :  { %p682_p13 = scmp.ne.s32.totalorder %s60_s17, %s681_s1  ;;  %p687_p1 = scmp.lt.s32.totalorder %s681_s1, %s681_s1 }
  0x3e   :  { %p688_p2 = por %p687_p1, %p686_p0 }
  0x40   :  { %p689_p3 = pnand %p688_p2, %p682_p13 }
  0x42   :  { %692 = shalt.err (!%p689_p3)
}
  0x43   :  { %65 = dma.hbm_to_vmem [thread:$0]  %s885_s5, 1024, %s60_s17, [#allocation10], %s724_s11, %s724_s11, %s725_s12  }
  0x44   :  { %715 = dma.done.wait [#allocation4], 64  }
  0x45   :  { %716 = vsyncadd [#allocation4], 4294967232 }
  0x46   :  { %717 = dma.done.wait [#allocation7], 2048  }
  0x47   :  { %718 = vsyncadd [#allocation7], 4294965248 }
  0x48   :  { %719 = dma.done.wait [#allocation10], 1024  }
  0x49   :  { %720 = vsyncadd [#allocation10], 4294966272  ;;  %v729_v0 = vmov 0.0   ;;  %vm730_vm0 = vmmov 0   ;;  %v577_v1 = vld [vmem:[#allocation6] sm:$0xff]   ;;  %v578_v2 = vld [vmem:[#allocation6 + $0x8] sm:$0xff]  }
  0x4a   :  { %508 = vmatprep.subr.bf16.mxu0 %v729_v0  ;;  %528 = vmatprep.subr.bf16.mxu1 %v729_v0  ;;  %v579_v3 = vld [vmem:[#allocation6 + $0x10] sm:$0xff]   ;;  %v584_v4 = vld [vmem:[#allocation8] sm:$0xff]   ;;  %v580_v5 = vld [vmem:[#allocation6 + $0x18] sm:$0xff]   ;;  %s731_s28 = smov [#allocation11]  }
  0x4b   :  { %524 = vmatprep.mubr.msk.bf16.mxu0 %vm730_vm0, %v729_v0  ;;  %544 = vmatprep.mubr.msk.bf16.mxu1 %vm730_vm0, %v729_v0  ;;  %v586_v6 = vld [vmem:[#allocation8 + $0x8] sm:$0xff]   ;;  %v587_v7 = vld [vmem:[#allocation8 + $0x10] sm:$0xff]   ;;  %v581_v8 = vld [vmem:[#allocation6 + $0x20] sm:$0xff]   ;;  %s443_s29 = sshll.u32 %s731_s28, 4  ;;  %s444_s29 = int_to_ptr.vmem [resolvable:$true] %s443_s29 }
  0x4c   :  { %509 = vmatpush3.bf16.msra.mxu0 %v577_v1  ;;  %529 = vmatpush3.bf16.msra.mxu1 %v584_v4  ;;  %v582_v9 = vld [vmem:[#allocation6 + $0x28] sm:$0xff]   ;;  %v588_v10 = vld [vmem:[#allocation8 + $0x18] sm:$0xff]   ;;  %v589_v11 = vld [vmem:[#allocation8 + $0x20] sm:$0xff]   ;;  %p698_p5 = scmp.lt.s32.totalorder %s444_s29, %s444_s29 }
  0x4d   :  { %510 = vmatprep.subr.bf16.mxu0 %v729_v0  ;;  %530 = vmatprep.subr.bf16.mxu1 %v729_v0  ;;  %v583_v12 = vld [vmem:[#allocation6 + $0x30] sm:$0xff]   ;;  %v590_v13 = vld [vmem:[#allocation8 + $0x28] sm:$0xff]   ;;  %v585_v14 = vld [vmem:[#allocation6 + $0x38] sm:$0xff]  }
  0x4e   :  { %v591_v15 = vld [vmem:[#allocation8 + $0x30] sm:$0xff]   ;;  %v86_v16 = vld [vmem:[#allocation3] sm:$0xf]  ;;  %v593_v18 = vld [vmem:[#allocation9] sm:$0xff]  }
  0x4f   :  { %v592_v17 = vld [vmem:[#allocation8 + $0x38] sm:$0xff]   ;;  %v594_v19 = vld [vmem:[#allocation9 + $0x8] sm:$0xff]   ;;  %v595_v20 = vld [vmem:[#allocation9 + $0x10] sm:$0xff]  }
  0x50   :  { %511 = vmatpush3.bf16.msra.mxu0 %v578_v2  ;;  %531 = vmatpush3.bf16.msra.mxu1 %v586_v6  ;;  %v596_v21 = vld [vmem:[#allocation9 + $0x18] sm:$0xff]   ;;  %v597_v22 = vld [vmem:[#allocation9 + $0x20] sm:$0xff]   ;;  %v598_v23 = vld [vmem:[#allocation9 + $0x28] sm:$0xff]  }
  0x51   :  { %512 = vmatprep.subr.bf16.mxu0 %v729_v0  ;;  %532 = vmatprep.subr.bf16.mxu1 %v729_v0  ;;  %v599_v24 = vld [vmem:[#allocation9 + $0x30] sm:$0xff]   ;;  %v600_v25 = vld [vmem:[#allocation9 + $0x38] sm:$0xff]  }
  0x52   :  { %v454_v26 = vld [vmem:[%s882_s2] ss:$0 sm:$0xff] }
  0x53   :  { %v463_v40 = vld [vmem:[%s884_s4] ss:$0 sm:$0xff]  ;;  %s693_s4 = scalar_lea.vmem %s444_s29, 128 }
  0x54   :  { %513 = vmatpush3.bf16.msra.mxu0 %v579_v3  ;;  %533 = vmatpush3.bf16.msra.mxu1 %v587_v7  ;;  %v480_v46 = vld [vmem:[%s886_s6] ss:$0 sm:$0xff]  ;;  %p694_p4 = scmp.ne.s32.totalorder %s444_s29, %s693_s4  ;;  %p699_p6 = scmp.lt.s32.totalorder %s693_s4, %s693_s4 }
  0x55   :  { %514 = vmatprep.subr.bf16.mxu0 %v729_v0  ;;  %534 = vmatprep.subr.bf16.mxu1 %v729_v0 }
  0x56   :  { %p700_p7 = por %p699_p6, %p698_p5 }
  0x58   :  { %515 = vmatpush3.bf16.msra.mxu0 %v580_v5  ;;  %535 = vmatpush3.bf16.msra.mxu1 %v588_v10  ;;  %p701_p8 = pnand %p700_p7, %p694_p4 }
  0x59   :  { %516 = vmatprep.subr.bf16.mxu0 %v729_v0  ;;  %536 = vmatprep.subr.bf16.mxu1 %v729_v0 }
  0x5c   :  { %517 = vmatpush3.bf16.msra.mxu0 %v581_v8  ;;  %537 = vmatpush3.bf16.msra.mxu1 %v589_v11 }
  0x5d   :  { %518 = vmatprep.subr.bf16.mxu0 %v729_v0  ;;  %538 = vmatprep.subr.bf16.mxu1 %v729_v0 }
  0x60   :  { %519 = vmatpush3.bf16.msra.mxu0 %v582_v9  ;;  %539 = vmatpush3.bf16.msra.mxu1 %v590_v13 }
  0x61   :  { %520 = vmatprep.subr.bf16.mxu0 %v729_v0  ;;  %540 = vmatprep.subr.bf16.mxu1 %v729_v0 }
  0x64   :  { %521 = vmatpush3.bf16.msra.mxu0 %v583_v12  ;;  %541 = vmatpush3.bf16.msra.mxu1 %v591_v15 }
  0x65   :  { %522 = vmatprep.subr.bf16.mxu0 %v729_v0  ;;  %542 = vmatprep.subr.bf16.mxu1 %v729_v0 }
  0x68   :  { %523 = vmatpush3.bf16.msra.mxu0 %v585_v14  ;;  %543 = vmatpush3.bf16.msra.mxu1 %v592_v17 }
  0x69   :  { %548 = vmatprep.subr.bf16.mxu0 %v729_v0 }
  0x6b   :  { %525 = vmatmul.mubr.bf16.vlgmr.msra.gmra.mrb[0].mxu0 %v86_v16  ;;  %545 = vmatmul.mubr.bf16.vlgmr.msra.gmra.mrb[0].mxu1 %v86_v16 }
  0x6c   :  { %564 = vmatprep.mubr.msk.bf16.mxu0 %vm730_vm0, %v729_v0  ;;  %549 = vmatpush3.bf16.msra.mxu0 %v593_v18 }
  0x6d   :  { %550 = vmatprep.subr.bf16.mxu0 %v729_v0 }
  0x70   :  { %551 = vmatpush3.bf16.msra.mxu0 %v594_v19 }
  0x71   :  { %552 = vmatprep.subr.bf16.mxu0 %v729_v0 }
  0x74   :  { %553 = vmatpush3.bf16.msra.mxu0 %v595_v20 }
  0x75   :  { %554 = vmatprep.subr.bf16.mxu0 %v729_v0 }
  0x78   :  { %555 = vmatpush3.bf16.msra.mxu0 %v596_v21 }
  0x79   :  { %556 = vmatprep.subr.bf16.mxu0 %v729_v0 }
  0x7c   :  { %557 = vmatpush3.bf16.msra.mxu0 %v597_v22 }
  0x7d   :  { %558 = vmatprep.subr.bf16.mxu0 %v729_v0 }
  0x80   :  { %559 = vmatpush3.bf16.msra.mxu0 %v598_v23 }
  0x81   :  { %560 = vmatprep.subr.bf16.mxu0 %v729_v0 }
  0x84   :  { %561 = vmatpush3.bf16.msra.mxu0 %v599_v24 }
  0x85   :  { %562 = vmatprep.subr.bf16.mxu0 %v729_v0 }
  0x88   :  { %563 = vmatpush3.bf16.msra.mxu0 %v600_v25 }
 0x13e   :  { %v192_v27 = vpop.f32.mrb[0].mxu0  ;;  %v303_v34 = vpop.f32.mrb[0].mxu1 }
 0x13f   :  { %v193_v28 = vadd.f32 %v454_v26, %v192_v27  ;;  %v526_v29 = vpop.f32.mrb[1].mxu0  ;;  %v546_v35 = vpop.f32.mrb[1].mxu1  ;;  %v304_v41 = vadd.f32 %v463_v40, %v303_v34 }
 0x140   :  { %v195_v30 = vpop.f32.mrb[2].mxu0  ;;  %v306_v36 = vpop.f32.mrb[2].mxu1 }
 0x141   :  { %v309_v31 = vsub.f32 0.0, %v193_v28  ;;  %v527_v32 = vpop.f32.mrb[3].mxu0  ;;  %v547_v37 = vpop.f32.mrb[3].mxu1 }
 0x143   :  { %v310_v33 = vmul.f32 1.442695, %v309_v31 }
 0x145   :  { %601 = vpow2.f32 %v310_v33 }
 0x14f   :  { %v602_v38 = vpop.eup %601 }
 0x150   :  { %v312_v39 = vadd.f32 1.0, %v602_v38 }
 0x152   :  { %603 = vrcp.f32 %v312_v39 }
 0x15c   :  { %v604_v42 = vpop.eup %603 }
 0x15d   :  { %v314_v43 = vmul.f32 %v604_v42, %v193_v28 }
 0x15f   :  { %v315_v44 = vmul.f32 %v314_v43, %v304_v41 }
 0x161   :  { %v317_v45 = vpack.c.bf16 %v315_v44, %v315_v44 }
 0x163   :  { %565 = vmatmul.mubr.bf16.vlgmr.msra.gmra.mrb[4].mxu0 %v317_v45 }
 0x236   :  { %v416_v47 = vpop.f32.mrb[4].mxu0 }
 0x237   :  { %v435_v48 = vadd.f32 %v480_v46, %v416_v47  ;;  %v566_v49 = vpop.f32.mrb[5].mxu0 }
 0x238   :  { %v419_v50 = vpop.f32.mrb[6].mxu0 }
 0x239   :  { %436 = vst [vmem:[#allocation11] sm:$0xff] %v435_v48  ;;  %v567_v51 = vpop.f32.mrb[7].mxu0 }
 0x23a   :  { %704 = shalt.err (!%p701_p8)
}
 0x23b   :  { %s705_s6 = scalar_lea.hbm %s887_s7, 128 }
 0x23c   :  { %p706_p9 = scmp.ne.s32.totalorder %s887_s7, %s705_s6  ;;  %p709_p10 = scmp.lt.u32.totalorder %s705_s6, %s887_s7 }
 0x23e   :  { %p711_p11 = pnand %p709_p10, %p706_p9 }
 0x240   :  { %714 = shalt.err (!%p711_p11)
}
 0x241   :  { %446 = dma.vmem_to_hbm [thread:$0]  %s444_s29, 128, %s887_s7, [#allocation5]  }
 0x242   :  { %721 = dma.done.wait [#allocation5], 128  }
 0x243   :  { %722 = vsyncadd [#allocation5], 4294967168 }
 0x244   :  { %450 = vsyncpa [#allocation4], 1 }
 0x245   :  { %451 = vsyncpa [#allocation7], 1 }
 0x246   :  { %452 = vsyncpa [#allocation10], 1 }
 0x247   :  { %453 = vsyncpa [#allocation5], 1 }

</bundles_post_ra>
